<compile_context>
chip_gen: v6e
topology: v6e:2x2x1
jax: 0.10.0
libtpu: 0.0.40
codegen_flags: <defaults>
</compile_context>

<pallas_src>
import functools

import jax
import jax.numpy as jnp
from jax.experimental import pallas as pl
from jax.experimental.pallas import tpu as pltpu

_LANES = 128
_SUBLANES = 8
_DEFAULT_TILE_ROWS = 4096  # 4096 x 128 x 4B = 2 MiB per f32 input block


def _rmse_kernel(x_ref, y_ref, o_ref, acc_ref, *,
                 total_n, tile_rows, need_mask, full_rows, rem):
    # Zero the vector accumulator on the first grid step.
    @pl.when(pl.program_id(0) == 0)
    def _():
        acc_ref[...] = jnp.zeros_like(acc_ref)

    d = x_ref[...].astype(jnp.float32) - y_ref[...].astype(jnp.float32)
    sq = d * d

    if need_mask:
        # Mask out elements past the true element count (ragged last tile /
        # lane padding). Compare global row & lane indices so padded values
        # (which may be garbage) never contribute.
        row = jax.lax.broadcasted_iota(jnp.int32, (tile_rows, _LANES), 0)
        lane = jax.lax.broadcasted_iota(jnp.int32, (tile_rows, _LANES), 1)
        grow = pl.program_id(0) * tile_rows + row
        mask = grow < full_rows
        if rem:
            mask = mask | ((grow == full_rows) & (lane < rem))
        sq = jnp.where(mask, sq, jnp.float32(0.0))

    # VPU-only accumulation into an (8, 128) vreg-shaped accumulator: split
    # the sublane axis into vreg groups and sum across groups (pure VPU adds,
    # no cross-lane work in the hot loop).
    acc_ref[...] += sq.reshape(tile_rows // _SUBLANES, _SUBLANES, _LANES).sum(axis=0)

    # Finalize once: single cross-lane reduce, mean over the true count, sqrt.
    @pl.when(pl.program_id(0) == pl.num_programs(0) - 1)
    def _():
        o_ref[0, 0] = jnp.sqrt(jnp.sum(acc_ref[...]) / jnp.float32(total_n))


def rmse_loss(x, y, *, tile_rows=_DEFAULT_TILE_ROWS):
    """sqrt(mean((x - y)**2)) over all elements, computed in a Pallas kernel."""
    assert x.shape == y.shape
    total_n = int(x.size)

    # Flatten; keep the original dtype (cast happens in the kernel).
    xf = x.reshape(-1)
    yf = y.reshape(-1)

    # Only pad (small tail) when the element count isn't a whole number of
    # 128-lane rows; the padded elements are excluded by the in-kernel mask.
    pad = (-total_n) % _LANES
    if pad:
        xf = jnp.pad(xf, (0, pad))
        yf = jnp.pad(yf, (0, pad))

    rows = (total_n + pad) // _LANES
    x2d = xf.reshape(rows, _LANES)
    y2d = yf.reshape(rows, _LANES)

    # Tile rows: as large as requested, but a multiple of 8 and no larger than
    # the array (so blocks never exceed the array when rows >= 8).
    tr = min(int(tile_rows), rows)
    tr = max(_SUBLANES, (tr // _SUBLANES) * _SUBLANES)
    n_tiles = pl.cdiv(rows, tr)

    # Masking is only needed when the tiled span overhangs the true count.
    need_mask = (n_tiles * tr * _LANES) != total_n
    full_rows = total_n // _LANES
    rem = total_n % _LANES

    kernel = functools.partial(
        _rmse_kernel,
        total_n=total_n,
        tile_rows=tr,
        need_mask=need_mask,
        full_rows=full_rows,
        rem=rem,
    )

    out = pl.pallas_call(
        kernel,
        out_shape=jax.ShapeDtypeStruct((1, 1), jnp.float32),
        grid_spec=pltpu.PrefetchScalarGridSpec(
            num_scalar_prefetch=0,
            grid=(n_tiles,),
            in_specs=[
                pl.BlockSpec((tr, _LANES), lambda i: (i, 0)),
                pl.BlockSpec((tr, _LANES), lambda i: (i, 0)),
            ],
            out_specs=pl.BlockSpec(
                (1, 1), lambda i: (0, 0), memory_space=pltpu.SMEM
            ),
            scratch_shapes=[pltpu.VMEM((_SUBLANES, _LANES), jnp.float32)],
        ),
        compiler_params=pltpu.CompilerParams(
            dimension_semantics=("arbitrary",),
        ),
    )(x2d, y2d)

    return out[0, 0]


if __name__ == "__main__":
    key = jax.random.PRNGKey(0)
    kx, ky = jax.random.split(key)

    # NCHW inputs, shapes consistent with the super-resolution module (small).
    x = jax.random.normal(kx, (2, 4, 16, 16), dtype=jnp.float32)
    y = jax.random.normal(ky, (2, 4, 16, 16), dtype=jnp.float32)

    loss = rmse_loss(x, y)
    jax.block_until_ready(loss)

    ref = jnp.sqrt(jnp.mean((x - y) ** 2))
    assert jnp.allclose(loss, ref, rtol=1e-5, atol=1e-6), (loss, ref)

    # Second check: a shape whose row count is not a multiple of the tile
    # rows, exercising the in-kernel ragged-tail masking path.
    kx2, ky2 = jax.random.split(ky)
    x2 = jax.random.normal(kx2, (1, 3, 64, 60), dtype=jnp.float32)  # 11520 elems = 90 rows
    y2 = jax.random.normal(ky2, (1, 3, 64, 60), dtype=jnp.float32)
    loss2 = rmse_loss(x2, y2)
    jax.block_until_ready(loss2)
    ref2 = jnp.sqrt(jnp.mean((x2 - y2) ** 2))
    assert jnp.allclose(loss2, ref2, rtol=1e-5, atol=1e-6), (loss2, ref2)

    print("KERNEL_OK")
</pallas_src>

<mosaic_0001>
module attributes {stable_mosaic.version = 11 : i64} {
  func.func @_rmse_kernel(%arg0: i32, %arg1: memref<16x128xf32, #tpu.memory_space<vmem>>, %arg2: memref<16x128xf32, #tpu.memory_space<vmem>>, %arg3: memref<1x1xf32, #tpu.memory_space<smem>>, %arg4: memref<8x128xf32, #tpu.memory_space<vmem>>) attributes {dimension_semantics = [#tpu.dimension_semantics<arbitrary>], iteration_bounds = array<i64: 1>, scalar_prefetch = 0 : i64, scratch_operands = 1 : i64, tpu.core_type = #tpu.core_type<tc>, window_params = [{transform_indices = @transform_0, window_bounds = array<i64: 16, 128>}, {transform_indices = @transform_1, window_bounds = array<i64: 16, 128>}, {transform_indices = @transform_2, window_bounds = array<i64: 1, 1>}]} {
    %c0_i32 = arith.constant 0 : i32
    %0 = arith.cmpi eq, %arg0, %c0_i32 : i32
    %1 = arith.extui %0 : i1 to i32
    %c0_i32_0 = arith.constant 0 : i32
    %2 = arith.cmpi ne, %1, %c0_i32_0 : i32
    scf.if %2 {
      %cst_10 = arith.constant 0.000000e+00 : f32
      %15 = vector.broadcast %cst_10 : f32 to vector<8x128xf32>
      %c0_11 = arith.constant 0 : index
      %c0_12 = arith.constant 0 : index
      %16 = vector.load %arg4[%c0_11, %c0_12] : memref<8x128xf32, #tpu.memory_space<vmem>>, vector<8x128xf32>
      tpu.vector_store %arg4[%c0_11, %c0_12], %15 {strides = array<i32>} : memref<8x128xf32, #tpu.memory_space<vmem>>, vector<8x128xf32>,
    } else {
    }
    %c0 = arith.constant 0 : index
    %c0_1 = arith.constant 0 : index
    %3 = vector.load %arg1[%c0, %c0_1] : memref<16x128xf32, #tpu.memory_space<vmem>>, vector<16x128xf32>
    %c0_2 = arith.constant 0 : index
    %c0_3 = arith.constant 0 : index
    %4 = vector.load %arg2[%c0_2, %c0_3] : memref<16x128xf32, #tpu.memory_space<vmem>>, vector<16x128xf32>
    %5 = arith.subf %3, %4 : vector<16x128xf32>
    %6 = arith.mulf %5, %5 : vector<16x128xf32>
    %c0_4 = arith.constant 0 : index
    %c0_5 = arith.constant 0 : index
    %7 = vector.load %arg4[%c0_4, %c0_5] : memref<8x128xf32, #tpu.memory_space<vmem>>, vector<8x128xf32>
    %8 = vector.shape_cast %6 : vector<16x128xf32> to vector<2x8x128xf32>
    %cst = arith.constant dense<0.000000e+00> : vector<8x128xf32>
    %9 = vector.multi_reduction <add>, %8, %cst [0] : vector<2x8x128xf32> to vector<8x128xf32>
    %10 = arith.addf %7, %9 : vector<8x128xf32>
    %c0_6 = arith.constant 0 : index
    %c0_7 = arith.constant 0 : index
    %11 = vector.load %arg4[%c0_6, %c0_7] : memref<8x128xf32, #tpu.memory_space<vmem>>, vector<8x128xf32>
    tpu.vector_store %arg4[%c0_6, %c0_7], %10 {strides = array<i32>} : memref<8x128xf32, #tpu.memory_space<vmem>>, vector<8x128xf32>,
    %c0_i32_8 = arith.constant 0 : i32
    %12 = arith.cmpi eq, %arg0, %c0_i32_8 : i32
    %13 = arith.extui %12 : i1 to i32
    %c0_i32_9 = arith.constant 0 : i32
    %14 = arith.cmpi ne, %13, %c0_i32_9 : i32
    scf.if %14 {
      %c0_10 = arith.constant 0 : index
      %c0_11 = arith.constant 0 : index
      %15 = vector.load %arg4[%c0_10, %c0_11] : memref<8x128xf32, #tpu.memory_space<vmem>>, vector<8x128xf32>
      %16 = vector.shape_cast %15 : vector<8x128xf32> to vector<1x8x128xf32>
      %cst_12 = arith.constant dense<0.000000e+00> : vector<1xf32>
      %17 = vector.multi_reduction <add>, %16, %cst_12 [1, 2] : vector<1x8x128xf32> to vector<1xf32>
      %18 = vector.shape_cast %17 : vector<1xf32> to vector<1x1x1xf32>
      %19 = vector.extract %18[0, 0, 0] : f32 from vector<1x1x1xf32>
      %cst_13 = arith.constant 2.048000e+03 : f32
      %20 = arith.divf %19, %cst_13 : f32
      %21 = math.sqrt %20 : f32
      %c0_14 = arith.constant 0 : index
      %c0_15 = arith.constant 0 : index
      %22 = memref.load %arg3[%c0_14, %c0_15] : memref<1x1xf32, #tpu.memory_space<smem>>
      memref.store %21, %arg3[%c0_14, %c0_15] : memref<1x1xf32, #tpu.memory_space<smem>>
    } else {
    }
    return
  }
  func.func @transform_0(%arg0: i32) -> (i32, i32) {
    %c0_i32 = arith.constant 0 : i32
    %c0_i32_0 = arith.constant 0 : i32
    return %arg0, %c0_i32 : i32, i32
  }
  func.func @transform_1(%arg0: i32) -> (i32, i32) {
    %c0_i32 = arith.constant 0 : i32
    %c0_i32_0 = arith.constant 0 : i32
    return %arg0, %c0_i32 : i32, i32
  }
  func.func @transform_2(%arg0: i32) -> (i32, i32) {
    %c0_i32 = arith.constant 0 : i32
    %c0_i32_0 = arith.constant 0 : i32
    %c0_i32_1 = arith.constant 0 : i32
    return %c0_i32, %c0_i32_0 : i32, i32
  }
}

</mosaic_0001>

<bundles_post_ra>
// kernel: tpu_custom_call.1
= control target key start
LH: loop header
LB: loop body
LE: loop exit
PB: predicated region body
PF: predicated region fallthrough
CT: control target
= control target key end

     0   :  { %7 = vsyncpa [#allocation4], 0  ;;  %s193_s0 = inlined_call_operand.hbm [shape: f32[16,128], index: 0, kind: input, shape index: {}]   ;;  %s194_s1 = inlined_call_operand.hbm [shape: f32[16,128], index: 1, kind: input, shape index: {}]   ;;  %s195_s2 = inlined_call_operand.hbm [shape: f32[1,1], index: 2, kind: output, shape index: {}]  }
   0x1   :  { %8 = vsyncpa [#allocation7], 0 }
   0x2   :  { %9 = vsyncpa [#allocation5], 0  ;;  %s164_s9 = smov [#allocation3]  }
   0x3   :  { %s15_s10 = sshll.u32 %s164_s9, 4  ;;  %s16_s10 = int_to_ptr.vmem [resolvable:$true] %s15_s10 }
   0x4   :  { %s118_s11 = scalar_lea.vmem %s16_s10, 256  ;;  %p123_p1 = scmp.lt.s32.totalorder %s16_s10, %s16_s10 }
   0x5   :  { %p119_p0 = scmp.ne.s32.totalorder %s16_s10, %s118_s11  ;;  %p124_p2 = scmp.lt.s32.totalorder %s118_s11, %s118_s11 }
   0x7   :  { %p125_p3 = por %p124_p2, %p123_p1 }
   0x9   :  { %p126_p4 = pnand %p125_p3, %p119_p0 }
   0xb   :  { %129 = shalt.err (!%p126_p4)
}
   0xc   :  { %s165_s12 = smov 128   ;;  %s166_s13 = smov 8  }
   0xd   :  { %21 = dma.hbm_to_vmem [thread:$0]  %s193_s0, 256, %s16_s10, [#allocation4], %s165_s12, %s165_s12, %s166_s13  }
   0xe   :  { %s167_s16 = smov [#allocation6]  }
   0xf   :  { %s27_s17 = sshll.u32 %s167_s16, 4  ;;  %s28_s17 = int_to_ptr.vmem [resolvable:$true] %s27_s17 }
  0x10   :  { %s138_s18 = scalar_lea.vmem %s28_s17, 256  ;;  %p143_p6 = scmp.lt.s32.totalorder %s28_s17, %s28_s17 }
  0x11   :  { %p139_p5 = scmp.ne.s32.totalorder %s28_s17, %s138_s18  ;;  %p144_p7 = scmp.lt.s32.totalorder %s138_s18, %s138_s18 }
  0x13   :  { %p145_p8 = por %p144_p7, %p143_p6 }
  0x15   :  { %p146_p9 = pnand %p145_p8, %p139_p5 }
  0x17   :  { %149 = shalt.err (!%p146_p9)
}
  0x18   :  { %33 = dma.hbm_to_vmem [thread:$0]  %s194_s1, 256, %s28_s17, [#allocation7], %s165_s12, %s165_s12, %s166_s13  }
  0x19   :  { %158 = dma.done.wait [#allocation4], 256  }
  0x1a   :  { %159 = vsyncadd [#allocation4], 4294967040 }
  0x1b   :  { %160 = dma.done.wait [#allocation7], 256  }
  0x1c   :  { %161 = vsyncadd [#allocation7], 4294967040  ;;  %v45_v0 = vld [vmem:[#allocation3] sm:$0xff]  ;;  %v46_v1 = vld [vmem:[#allocation3 + $0x8] sm:$0xff]  ;;  %s168_s22 = smov [#allocation8]  }
  0x1d   :  { %v47_v2 = vld [vmem:[#allocation6] sm:$0xff]  ;;  %v48_v3 = vld [vmem:[#allocation6 + $0x8] sm:$0xff] }
  0x1e   :  { %v49_v4 = vsub.f32 %v45_v0, %v47_v2  ;;  %v50_v5 = vsub.f32 %v46_v1, %v48_v3 }
  0x20   :  { %v51_v6 = vmul.f32 %v49_v4, %v49_v4  ;;  %v52_v7 = vmul.f32 %v50_v5, %v50_v5 }
  0x22   :  { %v54_v8 = vadd.f32 %v52_v7, %v51_v6 }
  0x24   :  { %61 = vadd.xlane.f32.xlu0 %v54_v8 }
  0xad   :  { %v62_v9 = vpop.xlane.xlu0 %61 }
  0xae   :  { %v63_v10 = vrot.slane %v62_v9, 4 }
  0xb0   :  { %v64_v11 = vadd.f32 %v63_v10, %v62_v9 }
  0xb2   :  { %v65_v12 = vrot.slane %v64_v11, 2 }
  0xb4   :  { %v66_v13 = vadd.f32 %v65_v12, %v64_v11 }
  0xb6   :  { %v67_v14 = vrot.slane %v66_v13, 1 }
  0xb8   :  { %v68_v15 = vadd.f32 %v67_v14, %v66_v13 }
  0xba   :  { %99 = vpush %v68_v15 }
  0xeb   :  { %s100_s0 = spop %99 }
  0xec   :  { %s72_s1 = smul.f32 0.00048828125, %s100_s0 }
  0xee   :  { %v73_v16 = vstv %s72_s1 }
  0xef   :  { %108 = vrsqrt.f32 %v73_v16  ;;  %vm76_vm0 = vcmp.eq.f32.partialorder %v73_v16, inf  ;;  %v79_v19 = vand.u32 2147483648, %v73_v16  ;;  %vm78_vm1 = vcmp.eq.f32.partialorder %v73_v16, 0.0 }
  0xfc   :  { %v109_v17 = vpop.eup %108 }
  0xfd   :  { %v75_v18 = vmul.f32 %v109_v17, %v73_v16 }
  0xff   :  { %v77_v20 = vsel %vm76_vm0, %v73_v16, %v75_v18 }
 0x100   :  { %v80_v21 = vsel %vm78_vm1, %v79_v19, %v77_v20 }
 0x101   :  { %101 = vpush %v80_v21 }
 0x132   :  { %s102_s21 = spop %101 }
 0x133   :  { %83 = sst [smem:[#allocation8]] %s102_s21 }
 0x134   :  { %91 = dma.smem_to_hbm %s168_s22, 16, %s195_s2, [#allocation5]  }
 0x135   :  { %162 = dma.done.wait [#allocation5], 16  }
 0x136   :  { %163 = vsyncadd [#allocation5], 4294967280 }
 0x137   :  { %95 = sfence }
 0x138   :  { %96 = vsyncpa [#allocation4], 1 }
 0x139   :  { %97 = vsyncpa [#allocation7], 1 }
 0x13a   :  { %98 = vsyncpa [#allocation5], 1 }

</bundles_post_ra>
